<compile_context>
chip_gen: v5e
topology: v5e:2x2
jax: 0.10.0
libtpu: 0.0.40
codegen_flags: <defaults>
</compile_context>

<pallas_src>
import functools

import jax
import jax.numpy as jnp
from jax.experimental import pallas as pl
from jax.experimental.pallas import tpu as pltpu


def _global_se_kernel(x_ref, w1t_ref, w2t_ref, bn_ref, o_ref, *, channels_last):
    # x_ref block: (B_TILE, C, HW) when channels_last=False (lanes = HW), or
    #              (B_TILE, HW, C) when channels_last=True  (lanes = C).
    # bn_ref rows: [bn1_scale / HW, bn1_shift, bn2_shift]; BN2 scale is folded
    # into w1t in the wrapper. Weights are pre-transposed to (Cin, Cout).
    a1 = bn_ref[0:1, :]                                    # (1, C)
    b1 = bn_ref[1:2, :]                                    # (1, C)
    b2 = bn_ref[2:3, :]                                    # (1, C)

    # Global average pool: f32 accumulate straight off the I/O-dtype block; the
    # f32 view is not kept live across the gate math (x_ref is re-read below).
    spatial_axis = 1 if channels_last else 2
    pooled = jnp.sum(x_ref[...].astype(jnp.float32), axis=spatial_axis)  # (B, C)

    # BN1 + ReLU + conv1 (BN2 scale pre-folded into w1t), BN2 shift + ReLU + conv2.
    h = jnp.maximum(pooled * a1 + b1, 0.0)                 # (B, C)
    h = jnp.dot(h.astype(w1t_ref.dtype), w1t_ref[...],
                preferred_element_type=jnp.float32)        # (B, C)
    h = jnp.maximum(h + b2, 0.0)
    h = jnp.dot(h.astype(w2t_ref.dtype), w2t_ref[...],
                preferred_element_type=jnp.float32)
    gate = jax.nn.sigmoid(h).astype(x_ref.dtype)           # (B, C)

    # Excite: exactly one multiply per stored element; store is lane-dense for
    # the layout chosen by the wrapper.
    if channels_last:
        o_ref[...] = x_ref[...] * gate[:, None, :]
    else:
        o_ref[...] = x_ref[...] * gate[:, :, None]


def _vmem_cap_bytes():
    """Per-core VMEM capacity; conservative fallback (v7x = 64 MiB)."""
    try:
        cap = getattr(pltpu.get_tpu_info(), "vmem_capacity_bytes", None)
        if cap:
            return int(cap)
    except Exception:
        pass
    return 64 << 20


def global_se(x_nchw, w1, w2, bn1_scale, bn1_shift, bn2_scale, bn2_shift,
              *, block_bytes_target=2 << 20, donate_input=False):
    """GlobalSE forward.

    x_nchw : (N, C, H, W), f32 or bf16; output has the same dtype/layout.
    w1, w2 : (Cout, Cin) == PyTorch Conv2d weight[:, :, 0, 0].
    bn*_scale / bn*_shift : (C,) eval-mode BatchNorm folded to scale/shift.
    donate_input : alias the output onto x's HBM buffer (only a win when x is
      actually donated through jit; otherwise XLA inserts a defensive copy).
    """
    N, C, H, W = x_nchw.shape
    HW = H * W
    dtype = x_nchw.dtype
    itemsize = jnp.dtype(dtype).itemsize

    # --- layout: put a lane-dense axis last (lane occupancy is the big lever) --
    # Native NCHW view (N, C, HW) is a free reshape and lane-dense when
    # HW % 128 == 0. For the common 7x7/14x14 SE case with C % 128 == 0, go
    # channels-last instead (one-off transpose; callers holding NHWC activations
    # should feed that layout upstream to skip it).
    channels_last = (HW % 128 != 0) and (C % 128 == 0)
    if channels_last:
        x = jnp.transpose(x_nchw.reshape(N, C, HW), (0, 2, 1))     # (N, HW, C)
        block = lambda b: (b, HW, C)
    else:
        x = x_nchw.reshape(N, C, HW)                               # free view
        block = lambda b: (b, C, HW)

    # --- batch tiling: ~block_bytes_target of x per grid step ------------------
    per_sample = C * HW * itemsize
    b_tile = int(max(1, min(N, block_bytes_target // max(per_sample, 1))))
    if N > 1:
        b_tile = min(b_tile, -(-N // 2))   # >=2 grid steps: pipelining + both v7x TCs
    grid = (pl.cdiv(N, b_tile),)
    # TODO(synk): if a single sample exceeds the VMEM budget (v7x 64 MiB, very
    # large C*HW), add a two-phase HW-tiled path (pool/gate pass + excite pass).

    # --- operands ---------------------------------------------------------------
    # Fold BN2 scale into W1, pre-transpose both weights to (Cin, Cout) so the
    # kernel does plain (B,C)@(C,C) dots; pack the BN vectors into one (3,C).
    f32 = jnp.float32
    w1t = (bn2_scale.astype(f32)[:, None] * w1.astype(f32)).T      # (Cin, Cout)
    w2t = w2.astype(f32).T                                         # (Cin, Cout)
    w_dtype = jnp.bfloat16 if C >= 512 else jnp.float32   # MXU accumulates in f32
    bn = jnp.stack([bn1_scale.astype(f32) / float(HW),
                    bn1_shift.astype(f32),
                    bn2_shift.astype(f32)], axis=0)                # (3, C)

    # Grid-invariant weights: single-buffer them once the double-buffered
    # footprint matters (large C) so they don't eat 2x VMEM.
    w_kwargs = dict(pipeline_mode=pl.Buffered(1)) if C >= 1024 else {}
    x_spec = pl.BlockSpec(block(b_tile), lambda i: (i, 0, 0))
    w_spec = pl.BlockSpec((C, C), lambda i: (0, 0), **w_kwargs)
    bn_spec = pl.BlockSpec((3, C), lambda i: (0, 0))

    # --- VMEM budget (generation-aware: v7x has 64 MiB, v5e/v6e 128 MiB) --------
    n_wbuf = 1 if C >= 1024 else 2
    block_bytes = b_tile * per_sample
    needed = (2 * block_bytes                       # x, double-buffered
              + 2 * block_bytes                     # out, double-buffered
              + 2 * b_tile * C * HW * 4             # in-kernel f32 temporaries
              + n_wbuf * 2 * C * C * jnp.dtype(w_dtype).itemsize
              + 2 * 3 * C * 4                       # BN vectors
              + (2 << 20))                          # compiler scratch headroom
    cap = _vmem_cap_bytes() - (8 << 20)
    vmem_limit = int(min(max(needed, 32 << 20), cap))

    cost = pl.CostEstimate(
        flops=int(N * (2 * C * HW + 4 * C * C + 6 * C)),
        transcendentals=int(N * C),                                 # sigmoid
        bytes_accessed=int(2 * N * per_sample
                           + 2 * C * C * jnp.dtype(w_dtype).itemsize
                           + 3 * C * 4),
    )

    out = pl.pallas_call(
        functools.partial(_global_se_kernel, channels_last=channels_last),
        out_shape=jax.ShapeDtypeStruct(x.shape, dtype),
        grid=grid,
        in_specs=[x_spec, w_spec, w_spec, bn_spec],
        out_specs=x_spec,
        input_output_aliases=({0: 0} if donate_input else {}),
        compiler_params=pltpu.CompilerParams(
            dimension_semantics=("parallel",),     # feeds both TCs on v7x
            vmem_limit_bytes=vmem_limit),
        cost_estimate=cost,
    )(x, w1t.astype(w_dtype), w2t.astype(w_dtype), bn)

    if channels_last:
        out = jnp.transpose(out, (0, 2, 1))
    return out.reshape(N, C, H, W)


# ------------------------------ test harness ---------------------------------

def _reference(x_nchw, w1, w2, s1, b1, s2, b2):
    xf = x_nchw.astype(jnp.float32)
    avg = jnp.mean(xf, axis=(2, 3))                                # (N, C)
    h = jnp.maximum(avg * s1 + b1, 0.0) @ w1.T                     # (N, C)
    g = jax.nn.sigmoid(jnp.maximum(h * s2 + b2, 0.0) @ w2.T)       # (N, C)
    return xf * g[:, :, None, None]


def _fold_bn(gamma, beta, mean, var, eps=1e-5):
    scale = gamma / jnp.sqrt(var + eps)
    shift = beta - mean * scale
    return scale, shift


def _make_params(key, C):
    ks = jax.random.split(key, 10)
    w1 = jax.random.normal(ks[0], (C, C), jnp.float32) * 0.5
    w2 = jax.random.normal(ks[1], (C, C), jnp.float32) * 0.5
    g1 = 1.0 + 0.1 * jax.random.normal(ks[2], (C,), jnp.float32)
    be1 = 0.1 * jax.random.normal(ks[3], (C,), jnp.float32)
    m1 = 0.1 * jax.random.normal(ks[4], (C,), jnp.float32)
    v1 = jnp.abs(1.0 + 0.1 * jax.random.normal(ks[5], (C,), jnp.float32))
    g2 = 1.0 + 0.1 * jax.random.normal(ks[6], (C,), jnp.float32)
    be2 = 0.1 * jax.random.normal(ks[7], (C,), jnp.float32)
    m2 = 0.1 * jax.random.normal(ks[8], (C,), jnp.float32)
    v2 = jnp.abs(1.0 + 0.1 * jax.random.normal(ks[9], (C,), jnp.float32))
    s1, sh1 = _fold_bn(g1, be1, m1, v1)
    s2, sh2 = _fold_bn(g2, be2, m2, v2)
    return w1, w2, s1, sh1, s2, sh2


if __name__ == "__main__":
    k0, k1, k2, k3 = jax.random.split(jax.random.PRNGKey(0), 4)

    # --- Case 1: f32, 16x16 maps (HW % 128 == 0 -> native NCHW, lanes = HW) ---
    N, C, H, W = 2, 4, 16, 16
    x = jax.random.normal(k0, (N, C, H, W), jnp.float32)
    w1, w2, s1, sh1, s2, sh2 = _make_params(k1, C)

    ref = _reference(x, w1, w2, s1, sh1, s2, sh2)
    out = jax.block_until_ready(global_se(x, w1, w2, s1, sh1, s2, sh2))
    assert out.shape == (N, C, H, W) and out.dtype == jnp.float32
    err = float(jnp.max(jnp.abs(out - ref)))
    assert err < 1e-3, f"f32 mismatch vs pure-JAX reference: {err}"

    # --- Case 2: bf16, 7x7 maps (HW % 128 != 0, C % 128 == 0 -> channels-last) -
    N2, C2, H2, W2 = 2, 128, 7, 7
    x2 = jax.random.normal(k2, (N2, C2, H2, W2), jnp.float32).astype(jnp.bfloat16)
    w1b, w2b, s1b, sh1b, s2b, sh2b = _make_params(k3, C2)

    ref2 = _reference(x2.astype(jnp.float32), w1b, w2b, s1b, sh1b, s2b, sh2b)
    out2 = jax.block_until_ready(global_se(x2, w1b, w2b, s1b, sh1b, s2b, sh2b))
    assert out2.shape == (N2, C2, H2, W2) and out2.dtype == jnp.bfloat16
    err2 = float(jnp.max(jnp.abs(out2.astype(jnp.float32) - ref2)))
    assert err2 < 6e-2, f"bf16 mismatch vs pure-JAX reference: {err2}"

    print("KERNEL_OK")
</pallas_src>

<mosaic_0001>
module attributes {stable_mosaic.version = 11 : i64} {
  func.func @_global_se_kernel(%arg0: i32, %arg1: memref<1x4x256xf32, #tpu.memory_space<vmem>>, %arg2: memref<4x4xf32, #tpu.memory_space<vmem>>, %arg3: memref<4x4xf32, #tpu.memory_space<vmem>>, %arg4: memref<3x4xf32, #tpu.memory_space<vmem>>, %arg5: memref<1x4x256xf32, #tpu.memory_space<vmem>>) attributes {dimension_semantics = [#tpu.dimension_semantics<parallel>], iteration_bounds = array<i64: 2>, scalar_prefetch = 0 : i64, scratch_operands = 0 : i64, tpu.core_type = #tpu.core_type<tc>, window_params = [{transform_indices = @transform_0, window_bounds = array<i64: 1, 4, 256>}, {pipeline_mode = #tpu.pipeline_mode<synchronous>, transform_indices = @transform_1, window_bounds = array<i64: 4, 4>}, {pipeline_mode = #tpu.pipeline_mode<synchronous>, transform_indices = @transform_2, window_bounds = array<i64: 4, 4>}, {pipeline_mode = #tpu.pipeline_mode<synchronous>, transform_indices = @transform_3, window_bounds = array<i64: 3, 4>}, {transform_indices = @transform_4, window_bounds = array<i64: 1, 4, 256>}]} {
    %c0 = arith.constant 0 : index
    %c0_0 = arith.constant 0 : index
    %0 = vector.load %arg4[%c0, %c0_0] : memref<3x4xf32, #tpu.memory_space<vmem>>, vector<1x4xf32>
    %c1 = arith.constant 1 : index
    %c0_1 = arith.constant 0 : index
    %1 = vector.load %arg4[%c1, %c0_1] : memref<3x4xf32, #tpu.memory_space<vmem>>, vector<1x4xf32>
    %c2 = arith.constant 2 : index
    %c0_2 = arith.constant 0 : index
    %2 = vector.load %arg4[%c2, %c0_2] : memref<3x4xf32, #tpu.memory_space<vmem>>, vector<1x4xf32>
    %c0_3 = arith.constant 0 : index
    %c0_4 = arith.constant 0 : index
    %c0_5 = arith.constant 0 : index
    %3 = vector.load %arg1[%c0_3, %c0_4, %c0_5] : memref<1x4x256xf32, #tpu.memory_space<vmem>>, vector<1x4x256xf32>
    %cst = arith.constant dense<0.000000e+00> : vector<1x4xf32>
    %4 = vector.multi_reduction <add>, %3, %cst [2] : vector<1x4x256xf32> to vector<1x4xf32>
    %5 = arith.mulf %4, %0 : vector<1x4xf32>
    %6 = arith.addf %5, %1 : vector<1x4xf32>
    %cst_6 = arith.constant 0.000000e+00 : f32
    %7 = vector.broadcast %cst_6 : f32 to vector<1x4xf32>
    %8 = arith.maximumf %6, %7 : vector<1x4xf32>
    %c0_7 = arith.constant 0 : index
    %c0_8 = arith.constant 0 : index
    %9 = vector.load %arg2[%c0_7, %c0_8] : memref<4x4xf32, #tpu.memory_space<vmem>>, vector<4x4xf32>
    %cst_9 = arith.constant dense<0.000000e+00> : vector<1x4xf32>
    %10 = tpu.matmul %8, %9, %cst_9 {dimension_numbers = #tpu.dot_dimension_numbers<[1], [0], [0], [1], [0, 0, 1, 1], [], []>} : vector<1x4xf32>, vector<4x4xf32>, vector<1x4xf32> -> vector<1x4xf32>
    %11 = arith.addf %10, %2 : vector<1x4xf32>
    %cst_10 = arith.constant 0.000000e+00 : f32
    %12 = vector.broadcast %cst_10 : f32 to vector<1x4xf32>
    %13 = arith.maximumf %11, %12 : vector<1x4xf32>
    %c0_11 = arith.constant 0 : index
    %c0_12 = arith.constant 0 : index
    %14 = vector.load %arg3[%c0_11, %c0_12] : memref<4x4xf32, #tpu.memory_space<vmem>>, vector<4x4xf32>
    %cst_13 = arith.constant dense<0.000000e+00> : vector<1x4xf32>
    %15 = tpu.matmul %13, %14, %cst_13 {dimension_numbers = #tpu.dot_dimension_numbers<[1], [0], [0], [1], [0, 0, 1, 1], [], []>} : vector<1x4xf32>, vector<4x4xf32>, vector<1x4xf32> -> vector<1x4xf32>
    %16 = arith.negf %15 : vector<1x4xf32>
    %17 = math.exp %16 : vector<1x4xf32>
    %cst_14 = arith.constant 1.000000e+00 : f32
    %18 = vector.broadcast %cst_14 : f32 to vector<1x4xf32>
    %19 = arith.addf %18, %17 : vector<1x4xf32>
    %20 = arith.divf %18, %19 : vector<1x4xf32>
    %c0_15 = arith.constant 0 : index
    %c0_16 = arith.constant 0 : index
    %c0_17 = arith.constant 0 : index
    %21 = vector.load %arg1[%c0_15, %c0_16, %c0_17] : memref<1x4x256xf32, #tpu.memory_space<vmem>>, vector<1x4x256xf32>
    %22 = vector.shape_cast %20 : vector<1x4xf32> to vector<1x4x1xf32>
    %23 = vector.broadcast %22 : vector<1x4x1xf32> to vector<1x4x256xf32>
    %24 = arith.mulf %21, %23 : vector<1x4x256xf32>
    %c0_18 = arith.constant 0 : index
    %c0_19 = arith.constant 0 : index
    %c0_20 = arith.constant 0 : index
    %25 = vector.load %arg5[%c0_18, %c0_19, %c0_20] : memref<1x4x256xf32, #tpu.memory_space<vmem>>, vector<1x4x256xf32>
    tpu.vector_store %arg5[%c0_18, %c0_19, %c0_20], %24 {strides = array<i32>} : memref<1x4x256xf32, #tpu.memory_space<vmem>>, vector<1x4x256xf32>,
    return
  }
  func.func @transform_0(%arg0: i32) -> (i32, i32, i32) {
    %c0_i32 = arith.constant 0 : i32
    %c0_i32_0 = arith.constant 0 : i32
    %c0_i32_1 = arith.constant 0 : i32
    return %arg0, %c0_i32, %c0_i32_0 : i32, i32, i32
  }
  func.func @transform_1(%arg0: i32) -> (i32, i32) {
    %c0_i32 = arith.constant 0 : i32
    %c0_i32_0 = arith.constant 0 : i32
    %c0_i32_1 = arith.constant 0 : i32
    return %c0_i32, %c0_i32_0 : i32, i32
  }
  func.func @transform_2(%arg0: i32) -> (i32, i32) {
    %c0_i32 = arith.constant 0 : i32
    %c0_i32_0 = arith.constant 0 : i32
    %c0_i32_1 = arith.constant 0 : i32
    return %c0_i32, %c0_i32_0 : i32, i32
  }
  func.func @transform_3(%arg0: i32) -> (i32, i32) {
    %c0_i32 = arith.constant 0 : i32
    %c0_i32_0 = arith.constant 0 : i32
    %c0_i32_1 = arith.constant 0 : i32
    return %c0_i32, %c0_i32_0 : i32, i32
  }
  func.func @transform_4(%arg0: i32) -> (i32, i32, i32) {
    %c0_i32 = arith.constant 0 : i32
    %c0_i32_0 = arith.constant 0 : i32
    %c0_i32_1 = arith.constant 0 : i32
    return %arg0, %c0_i32, %c0_i32_0 : i32, i32, i32
  }
}

</mosaic_0001>

<bundles_post_ra>
// kernel: tpu_custom_call.1
= control target key start
LH: loop header
LB: loop body
LE: loop exit
PB: predicated region body
PF: predicated region fallthrough
CT: control target
= control target key end

     0   :  { %9 = vsyncpa [#allocation3], 0  ;;  %s1011_s0 = inlined_call_operand.hbm [shape: f32[2,4,256], index: 0, kind: input, shape index: {}]   ;;  %s1012_s1 = inlined_call_operand.hbm [shape: f32[4,4], index: 1, kind: input, shape index: {}]   ;;  %s1013_s2 = inlined_call_operand.hbm [shape: f32[4,4], index: 2, kind: input, shape index: {}]   ;;  %s1014_s3 = inlined_call_operand.hbm [shape: f32[3,4], index: 3, kind: input, shape index: {}]   ;;  %s1015_s4 = inlined_call_operand.hbm [shape: f32[2,4,256], index: 4, kind: output, shape index: {}]  }
   0x1   :  { %11 = vsyncpa [#allocation3 + $0x1], 0 }
   0x2   :  { %12 = vsyncpa [#allocation6], 0 }
   0x3   :  { %13 = vsyncpa [#allocation9], 0 }
   0x4   :  { %14 = vsyncpa [#allocation4], 0 }
   0x5   :  { %16 = vsyncpa [#allocation4 + $0x1], 0  ;;  %s851_s15 = smov 0   ;;  %s853_s16 = smov 0  }
   0x6   :  { %s855_s17 = smov 0   ;;  %s857_s18 = smov 0  }
   0x7 LB: > { %s872_s19 = sadd.s32 4294967295, %s819_s18   ;;  %s509_s20 = sadd.s32 4294967294, %s819_s18   ;;  %s819_s18 = sphi %s857_s18, %s1025_s18   ;;  %s815_s17 = sphi %s855_s17, %s1024_s17   ;;  %s811_s16 = sphi %s853_s16, %s1023_s16   ;;  %s807_s15 = sphi %s851_s15, %s1022_s15  }
   0x8   : > { %p42_p0 = scmp.ne.s32.totalorder %s811_s16, %s807_s15  ;;  %p43_p1 = scmp.eq.s32.totalorder %s872_s19, 0 }
   0x9   : > { %p129_p2 = scmp.eq.s32.totalorder %s872_s19, 1  ;;  %p135_p3 = scmp.eq.s32.totalorder %s509_s20, 1 }
   0xa   : > { %p881_p4 = por %p43_p1, %p42_p0  ;;  %p510_p5 = scmp.ge.s32.totalorder %s819_s18, 1 }
   0xb   : > { %p886_p6 = por %p135_p3, %p42_p0  ;;  %p142_p7 = scmp.lt.s32.totalorder %s819_s18, 3 }
   0xc   : > { %s154_s25 = sshll.u32 %s1012_s1, 4  ;;  %s821_s27 = smov [#allocation5]   ;;  %s155_s25 = int_to_ptr.hbm [resolvable:$true] %s154_s25 }
   0xd   : > { %p894_p8 = pnand %p510_p5, %p142_p7  ;;  %s156_s28 = sshll.u32 %s821_s27, 4  ;;  %s157_s28 = int_to_ptr.vmem [resolvable:$true] %s156_s28 }
   0xe   : > { %s166_s5 = sshll.u32 %s1013_s2, 4  ;;  %s178_s8 = sshll.u32 %s1014_s3, 4  ;;  %s167_s5 = int_to_ptr.hbm [resolvable:$true] %s166_s5  ;;  %s179_s8 = int_to_ptr.hbm [resolvable:$true] %s178_s8 }
   0xf   : > { %p552_p10 = pneg %p894_p8  ;;  %s822_s9 = smov [#allocation7]  }
  0x10   : > { %s168_s10 = sshll.u32 %s822_s9, 4  ;;  %s823_s11 = smov [#allocation8]   ;;  %s169_s10 = int_to_ptr.vmem [resolvable:$true] %s168_s10 }
  0x11   : > { %p553_p11 = pnand %p552_p10, %p43_p1  ;;  %s180_s12 = sshll.u32 %s823_s11, 4  ;;  %s181_s12 = int_to_ptr.vmem [resolvable:$true] %s180_s12 }
  0x12   : > { %s910_s13 = sadd.s32 1, %s819_s18   ;;  %s29_s20 = sadd.s32 1, %s815_s17 }
  0x13   : > { %555 = dma.hbm_to_vmem [thread:$0]  (!%p553_p11), %s155_s25, 64, %s157_s28, [#allocation6]  }
  0x14   : > { %558 = dma.hbm_to_vmem [thread:$0]  (!%p553_p11), %s167_s5, 64, %s169_s10, [#allocation6]  }
  0x15   : > { %561 = dma.hbm_to_vmem [thread:$0]  (!%p553_p11), %s179_s8, 64, %s181_s12, [#allocation9]  }
  0x16   : > { %s26_s14 = ssub.s32 %s819_s18, %s910_s13  ;;  %p36_p13 = scmp.ne.s32.totalorder %s815_s17, %s811_s16 }
  0x17   : > { %p27_p12 = scmp.eq.s32.totalorder %s26_s14, 0  ;;  %p37_p0 = scmp.eq.s32.totalorder %s819_s18, 0 }
  0x18   : > { %p923_p3 = por %p129_p2, %p36_p13  ;;  %p573_p5 = scmp.lt.s32.totalorder %s819_s18, 2 }
  0x19   : > { %s919_s23 = scalar_select %p27_p12, %s815_s17, %s29_s20  }
  0x1a   : > { %s191_s25 = sand.u32 1, %s815_s17   ;;  %s534_s27 = sshll.u32 %s819_s18, 3 }
  0x1b   : > { %p38_p7 = por %p37_p0, %p36_p13  ;;  %s515_s28 = sshll.u32 %s191_s25, 3 }
  0x1c   : > { %s200_s5 = scalar_lea.hbm %s1011_s0, %s534_s27  ;;  %s195_s7 = scalar_lea.vmem [#allocation2], %s515_s28 }
  0x1d   : > { %s202_s6 = sshll.u32 %s200_s5, 4  ;;  %s204_s8 = sshll.u32 %s195_s7, 4  ;;  %s203_s6 = int_to_ptr.hbm [resolvable:$true] %s202_s6  ;;  %s205_s8 = int_to_ptr.vmem [resolvable:$true] %s204_s8 }
  0x1e   : > { %p933_p10 = pnand %p573_p5, %p38_p7  ;;  %s192_s10 = scalar_lea.sflag [#allocation3], %s191_s25 }
  0x1f   : > { %s715_s11 = sshra.s32 %s203_s6, 4  ;;  %s722_s27 = scalar_lea.hbm %s1011_s0, 16  ;;  %s716_s11 = int_to_ptr.hbm [resolvable:$true] %s715_s11 }
  0x20   : > { %s717_s12 = scalar_lea.hbm %s716_s11, 8  ;;  %p719_p11 = pneg %p933_p10 }
  0x21   : > { %p718_p2 = scmp.ne.s32.totalorder %s716_s11, %s717_s12  ;;  %p723_p0 = scmp.lt.s32.totalorder %s716_s11, %s1011_s0 }
  0x22   : > { %p724_p5 = scmp.lt.s32.totalorder %s722_s27, %s717_s12 }
  0x23   : > { %p720_p12 = pnand %p719_p11, %p718_p2 }
  0x24   : > { %p725_p7 = por %p724_p5, %p723_p0 }
  0x25   : > { %p721_p13 = pneg %p720_p12 }
  0x27   : > { %p726_p9 = pnand %p725_p7, %p721_p13 }
  0x29   : > { %729 = shalt.err (!%p726_p9)
}
  0x2a   : > { %565 = dma.hbm_to_vmem [thread:$0]  (!%p933_p10), %s203_s6, 128, %s205_s8, %s192_s10  }
  0x2b   : > { %213 = sbr.rel (%p894_p8) target bundleno = 707 (0x2c3), region = 36  ;;  %s950_s25 = sand.u32 (!%p894_p8), 1, %s811_s16  }
  0x2c   : > { %s519_s30 = sshll.u32 (!%p894_p8), %s950_s25, 3  ;;  %s216_s5 = scalar_lea.sflag (!%p894_p8), [#allocation3], %s950_s25 }
  0x2d   : > { %s219_s7 = scalar_lea.vmem (!%p894_p8), [#allocation2], %s519_s30 }
  0x30   : > { %790 = dma.done.wait (%p881_p4), %s216_s5, 128  }
  0x31   : > { %792 = vsyncadd (%p881_p4), %s216_s5, 4294967168 }
  0x32   : > { %794 = dma.done.wait (%p43_p1), [#allocation6], 128  }
  0x33   : > { %796 = vsyncadd (%p43_p1), [#allocation6], 4294967168 }
  0x34   : > { %798 = dma.done.wait (%p43_p1), [#allocation9], 64  }
  0x35   : > { %800 = vsyncadd (%p43_p1), [#allocation9], 4294967232  ;;  %v278_v0 = vlaneseq  ;;  %v968_v2 = vld [vmem:[%s219_s7] sm:$0xff]  ;;  %v620_v3 = vld [vmem:[#allocation8 + $0x1] ss:$0 sm:$0xff]  ;;  %vm270_vm0 = vcmask 1043456  }
  0x36   : > { %265 = vst [vmem:[#allocation1] ss:$2 sm:$0xff] %v968_v2  ;;  %v619_v9 = vld [vmem:[#allocation8] ss:$0 sm:$0xff]  ;;  %v824_v10 = vmov 0   ;;  %vm305_vm1 = vcmask 31744  }
  0x37   : > { %v279_v1 = vshrl.u32 %v278_v0, 7  ;;  %v297_v17 = vld [vmem:[#allocation5] sm:$0xf]  ;;  %v303_v18 = vand.u32 127, %v278_v0  ;;  %v332_v21 = vld [vmem:[#allocation7] sm:$0xf] }
  0x38   : > { %524 = vmatpush.msk.msra.mxu0 %vm270_vm0, %v297_v17  ;;  %526 = vmatpush.msk.msra.mxu1 %vm270_vm0, %v332_v21  ;;  %v262_v22 = vld [vmem:[#allocation8 + $0x2] sm:$0x1]  ;;  %v825_v41 = vmov 839922192   ;;  %s535_s21 = sshll.u32 %s872_s19, 3  ;;  %s259_s9 = scalar_lea.vmem [#allocation10], %s519_s30 }
  0x39   : > { %615 = vset.pattern.permute.xlu0 %v279_v1  ;;  %616 = vset.pattern.permute.xlu1 %v279_v1  ;;  %v387_v42 = vunpack.c.l.s4 %v825_v41  ;;  %s405_s8 = scalar_lea.hbm %s1015_s4, %s535_s21  ;;  %s407_s10 = sshll.u32 %s259_s9, 4  ;;  %s408_s10 = int_to_ptr.vmem [resolvable:$true] %s407_s10 }
  0x3a   : > { %618 = vset.pattern.permute.xlu2 %v279_v1  ;;  %s409_s11 = sshll.u32 %s405_s8, 4  ;;  %s394_s12 = scalar_lea.sflag [#allocation4], %s950_s25  ;;  %s410_s11 = int_to_ptr.hbm [resolvable:$true] %s409_s11 }
  0x3b   : > { %v388_v43 = vunpack.c.0.s8 %v387_v42  ;;  %s759_s14 = sshra.s32 %s410_s11, 4  ;;  %s765_s28 = scalar_lea.hbm %s1015_s4, 16  ;;  %s760_s14 = int_to_ptr.hbm [resolvable:$true] %s759_s14 }
  0x3c   : > { %s761_s19 = scalar_lea.hbm %s760_s14, 8  ;;  %p766_p9 = scmp.lt.s32.totalorder %s760_s14, %s1015_s4 }
  0x3d   : > { %v266_v4 = vld.sshfl [vmem:[#allocation1] sm:$0xff pattern:$0x75316420]  ;;  %v267_v5 = vld.sshfl [vmem:[#allocation1 + $0x8] sm:$0xff pattern:$0x75316420]  ;;  %p762_p1 = scmp.ne.s32.totalorder %s760_s14, %s761_s19  ;;  %p767_p10 = scmp.lt.s32.totalorder %s765_s28, %s761_s19 }
  0x3e   : > { %v271_v6 = vsel %vm270_vm0, %v266_v4, 0.0  ;;  %v272_v7 = vsel %vm270_vm0, %v267_v5, 0.0 }
  0x3f   : > { %v273_v8 = vadd.f32 %v272_v7, %v271_v6  ;;  %p763_p4 = pnand %p762_p1, %p923_p3  ;;  %p768_p2 = por %p767_p10, %p766_p9 }
  0x41   : > { %292 = vperm.xlu1 %616, %v620_v3   ;;  %274 = vadd.xlane.f32.xlu0 %v273_v8  ;;  %p764_p8 = pneg %p763_p4 }
  0x43   : > { %p769_p11 = pnand %p768_p2, %p764_p8 }
  0x49   : > { %617 = vset.pattern.permute.xlu1 %v824_v10 }
  0x55   : > { %282 = vperm.xlu0 %615, %v619_v9  }
  0xb3   : > { %v293_v13 = vpop.permute.xlu1 %292 }
  0xb4   : > { %v275_v11 = vpop.xlane.xlu0 %274 }
  0xc7   : > { %v283_v12 = vpop.permute.xlu0 %282 }
  0xc8   : > { %v285_v14 = vmul.f32 %v283_v12, %v275_v11 }
  0xca   : > { %v295_v15 = vadd.f32 %v293_v13, %v285_v14 }
  0xcc   : > { %v296_v16 = vmax.f32 %v295_v15, 0.0 }
  0xce   : > { %300 = vperm.xlu1 %617, %v296_v16  }
 0x140   : > { %v301_v19 = vpop.permute.xlu1 %300 }
 0x141   : > { %v304_v20 = vperm.slane %v301_v19, %v303_v18 }
 0x143   : > { %525 = vmatmul.msk.f32.vlgmr.msra.gmra.mxu0 %vm305_vm1, %v304_v20 }
 0x1c0   : > { %v328_v23 = vpop.f32.mrf.mxu0 }
 0x1c1   : > { %v329_v24 = vadd.f32 %v328_v23, %v262_v22 }
 0x1c3   : > { %v331_v25 = vmax.f32 %v329_v24, 0.0 }
 0x1c5   : > { %527 = vmatmul.msk.f32.vlgmr.msra.gmra.mxu1 %vm305_vm1, %v331_v25 }
 0x242   : > { %v356_v26 = vpop.f32.mrf.mxu1 }
 0x243   : > { %v528_v27 = vmul.f32 -1.442695, %v356_v26 }
 0x245   : > { %621 = vpow2.f32 %v528_v27 }
 0x24b   : > { %v622_v28 = vpop.eup %621 }
 0x24c   : > { %v362_v29 = vadd.f32 1.0, %v622_v28 }
 0x24e   : > { %623 = vrcp.f32 %v362_v29  ;;  %v374_v33 = vand.u32 2147483648, %v362_v29  ;;  %v372_v35 = vand.u32 2147483647, %v362_v29  ;;  %vm368_vm3 = vweird.f32 %v362_v29 }
 0x250   : > { %v375_v37 = vor.u32 1.1754944e-38, %v374_v33  ;;  %vm373_vm5 = vcmp.eq.f32.partialorder %v372_v35, 8.507059e+37 }
 0x254   : > { %v624_v30 = vpop.eup %623 }
 0x255   : > { %v364_v31 = vmul.f32 %v624_v30, %v362_v29  ;;  %vm369_vm2 = vweird.f32 %v624_v30 }
 0x256   : > { %vm370_vm4 = vmor %vm368_vm3, %vm369_vm2 }
 0x257   : > { %v365_v32 = vsub.f32 1.0, %v364_v31 }
 0x259   : > { %v366_v34 = vmul.f32 %v624_v30, %v365_v32 }
 0x25b   : > { %v367_v36 = vadd.f32 %v624_v30, %v366_v34 }
 0x25d   : > { %v371_v38 = vsel %vm370_vm4, %v624_v30, %v367_v36 }
 0x25e   : > { %v376_v39 = vsel %vm373_vm5, %v375_v37, %v371_v38 }
 0x25f   : > { %v378_v40 = vperm.slane %v376_v39, 0 }
 0x261   : > { %383 = vperm.xlu2 %618, %v378_v40  }
 0x2bb   : > { %v384_v44 = vpop.permute.xlu2 %383 }
 0x2bc   : > { %v389_v45 = vperm.slane %v384_v44, %v388_v43 }
 0x2be   : > { %v391_v46 = vmul.f32 %v389_v45, %v968_v2 }
 0x2c0   : > { %392 = vst [vmem:[%s259_s9] sm:$0xff] %v391_v46 }
 0x2c1   : > { %772 = shalt.err (!%p769_p11)
}
 0x2c2   : > { %550 = dma.vmem_to_hbm [thread:$0]  (%p923_p3), %s408_s10, 128, %s410_s11, %s394_s12  }
 0x2c3 PF: > { %s421_s25 = sand.u32 1, %s807_s15   ;;  %p1021_p12 = scmp.ge.s32.totalorder %s819_s18, 2 }
 0x2c4   : > { %s422_s5 = scalar_lea.sflag [#allocation4], %s421_s25 }
 0x2c5   : > { %p567_p13 = pnand %p1021_p12, %p886_p6 }
 0x2c7   : > { %p568_p0 = pneg %p567_p13 }
 0x2c9   : > { %802 = dma.done.wait (%p568_p0), %s422_s5, 128  }
 0x2ca   : > { %804 = vsyncadd (%p568_p0), %s422_s5, 4294967168  ;;  %p19_p5 = scmp.ge.s32.totalorder %s910_s13, 4   ;;  %s1022_s15 = smov %s811_s16 }
 0x2cb   : > { %s1023_s16 = smov %s815_s17  ;;  %s1024_s17 = smov %s919_s23 }
 0x2cc   : > { %s1025_s18 = smov %s910_s13  ;;  %21 = sbr.rel (!%p19_p5) target bundleno = 7 (0x7), region = 93 }
 0x2d1   :  { %428 = vsyncpa [#allocation3], 1 }
 0x2d2   :  { %430 = vsyncpa [#allocation3 + $0x1], 1 }
 0x2d3   :  { %431 = vsyncpa [#allocation6], 1 }
 0x2d4   :  { %432 = vsyncpa [#allocation9], 1 }
 0x2d5   :  { %433 = vsyncpa [#allocation4], 1 }
 0x2d6   :  { %435 = vsyncpa [#allocation4 + $0x1], 1 }

</bundles_post_ra>
